<compile_context>
chip_gen: v7x
topology: tpu7x:2x2x1
jax: 0.10.0
libtpu: 0.0.40
codegen_flags: <defaults>
</compile_context>

<pallas_src>
import functools

import jax
import jax.numpy as jnp
from jax.experimental import pallas as pl
from jax.experimental.pallas import tpu as pltpu


# ---------------------------------------------------------------------------
# Fused kernel: per grid step, a block of BN batches:
#   v1    = x1 @ W1s + b1s                     (scale pre-folded into W1s/b1s)
#   s     = x2_blk @ v1^T                      (BN*M, S) flattened slab
#   p     = softmax(s)                         f32 softmax
#   v5    = p @ x3_blk                         batched (BN, M, D)
#   out   = v5 @ W23 + b23                     folded Linear_d3(Linear_d2(.))
# ---------------------------------------------------------------------------
def _fused_kernel(x1_ref, w1_ref, b1_ref, x2_ref, x3_ref, w23_ref, b23_ref,
                  o_ref, *, compute_dtype):
    BN, M, D = x2_ref.shape
    S = x1_ref.shape[0]
    cd = compute_dtype
    approx = cd == jnp.bfloat16  # fast path pairs bf16 MXU inputs + EUP recip

    # v1 (scale already folded into W1s/b1s in the wrapper), f32 accumulation.
    v1 = (jnp.dot(x1_ref[...], w1_ref[...], preferred_element_type=jnp.float32)
          + b1_ref[...]).astype(cd)                       # (S, D)

    x2 = x2_ref[...].reshape(BN * M, D)                   # flattened slab (cd)

    # scores = x2 @ v1^T -> (BN*M, S), f32 accumulation on the MXU
    s = jax.lax.dot_general(
        x2, v1, dimension_numbers=(((1,), (1,)), ((), ())),
        preferred_element_type=jnp.float32)

    # numerically stable softmax over the last axis, all-f32 elementwise
    m = jnp.max(s, axis=-1, keepdims=True)
    e = jnp.exp(s - m)
    p = e * pl.reciprocal(jnp.sum(e, axis=-1, keepdims=True), approx=approx)

    # v5[b] = p[b] @ x3[b]  -> (BN, M, D) batched matmul
    p3 = p.reshape(BN, M, S).astype(cd)
    v5 = jnp.einsum("bms,bsd->bmd", p3, x3_ref[...],
                    preferred_element_type=jnp.float32)

    # folded tail linear on the flattened slab: v7 = v5 @ (W2@W3) + (b2@W3+b3)
    v5f = v5.reshape(BN * M, D).astype(cd)
    v7 = jnp.dot(v5f, w23_ref[...],
                 preferred_element_type=jnp.float32) + b23_ref[...]

    o_ref[...] = v7.reshape(BN, M, D).astype(o_ref.dtype)


def _choose_bn(Nb, M, S, D, *, target_rows=256, slab_cap_bytes=8 << 20):
    """Pick a batch block BN that (a) divides N (no padding), (b) keeps >= 2
    grid steps when possible (v7x megacore), (c) fills >= 256 MXU rows when
    possible (v6e/v7x), (d) keeps per-step slabs comfortably inside VMEM."""
    divs = [d for d in range(1, Nb + 1) if Nb % d == 0]
    fits = [d for d in divs if d * (M + S) * D * 4 <= slab_cap_bytes] or [1]
    cands = [d for d in fits if Nb // d >= 2] or fits
    full = [d for d in cands if d * M >= target_rows]
    return min(full) if full else max(cands)


def model_forward(x1, x2, x3, params, N_attr, *, compute_dtype=jnp.bfloat16,
                  out_dtype=jnp.float32):
    """x1: (S, D), x2: (N, M, D), x3: (N, S, D) -> (N, M, D)."""
    S, D = x1.shape
    Nb, M, _ = x2.shape
    w1, b1, w2, b2, w3, b3 = params  # w*: (D_in, D_out); b*: (1, D)
    scale = float(N_attr) ** (-0.5)

    # --- one-time algebraic folds (exact math, done once in the wrapper) ----
    w1s = w1 * scale                 # fold softmax scale into Linear_d1
    b1s = b1 * scale
    w23 = w2 @ w3                    # fold Linear_d2 -> Linear_d3 (no nonlin)
    b23 = b2 @ w3 + b3

    # --- cast matmul operands to the compute dtype in the wrapper -----------
    # (halves x2/x3 HBM->VMEM DMA bytes on the bf16 path); biases stay f32.
    cd = compute_dtype
    x1c = x1.astype(cd)
    w1c = w1s.astype(cd)
    w23c = w23.astype(cd)
    x2c = x2.astype(cd)
    x3c = x3.astype(cd)
    b1f = b1s.astype(jnp.float32)
    b23f = b23.astype(jnp.float32)

    # --- batch blocking (divisor of N -> no padding, no wasted steps) -------
    BN = _choose_bn(Nb, M, S, D)
    steps = Nb // BN

    # --- explicit VMEM budget: double-buffered per-step slabs + weights -----
    it = jnp.dtype(cd).itemsize
    per_step = 2 * (BN * M * D * it + BN * S * D * it
                    + BN * M * D * jnp.dtype(out_dtype).itemsize)
    shared = 2 * ((S * D + 2 * D * D) * it + 2 * D * 4)
    vmem_limit = int(min(max(2 * (per_step + shared), 32 << 20), 64 << 20))

    kernel = functools.partial(_fused_kernel, compute_dtype=cd)

    out = pl.pallas_call(
        kernel,
        out_shape=jax.ShapeDtypeStruct((Nb, M, D), out_dtype),
        grid=(steps,),
        in_specs=[
            pl.BlockSpec((S, D), lambda n: (0, 0)),          # x1 (shared)
            pl.BlockSpec((D, D), lambda n: (0, 0)),          # W1 * scale
            pl.BlockSpec((1, D), lambda n: (0, 0)),          # b1 * scale
            pl.BlockSpec((BN, M, D), lambda n: (n, 0, 0)),   # x2 batch block
            pl.BlockSpec((BN, S, D), lambda n: (n, 0, 0)),   # x3 batch block
            pl.BlockSpec((D, D), lambda n: (0, 0)),          # W23 = W2 @ W3
            pl.BlockSpec((1, D), lambda n: (0, 0)),          # b23
        ],
        out_specs=pl.BlockSpec((BN, M, D), lambda n: (n, 0, 0)),
        compiler_params=pltpu.CompilerParams(
            dimension_semantics=("parallel",),
            vmem_limit_bytes=vmem_limit),
    )(x1c, w1c, b1f, x2c, x3c, w23c, b23f)

    return out


def reference_forward(x1, x2, x3, params, N_attr):
    w1, b1, w2, b2, w3, b3 = params
    v1 = x1 @ w1 + b1
    v2 = jnp.einsum("nmd,sd->nms", x2, v1)
    v3 = v2 * (float(N_attr) ** (-0.5))
    v4 = jax.nn.softmax(v3, axis=-1)
    v5 = jnp.einsum("nms,nsd->nmd", v4, x3)
    v6 = v5 @ w2 + b2
    v7 = v6 @ w3 + b3
    return v7


def init_params(key, D):
    # Deterministic init mimicking torch.nn.Linear (uniform +-1/sqrt(D)).
    ks = jax.random.split(key, 6)
    bound = 1.0 / (D ** 0.5)

    def u(k, shape):
        return jax.random.uniform(k, shape, jnp.float32, -bound, bound)

    # Stored pre-transposed as (D_in, D_out); biases as (1, D) rows.
    w1, b1 = u(ks[0], (D, D)), u(ks[1], (1, D))
    w2, b2 = u(ks[2], (D, D)), u(ks[3], (1, D))
    w3, b3 = u(ks[4], (D, D)), u(ks[5], (1, D))
    return (w1, b1, w2, b2, w3, b3)


if __name__ == "__main__":
    # Small shapes consistent with the forward pass:
    #   x1: (S, D), x2: (N, M, D), x3: (N, S, D)  -> out: (N, M, D)
    N, D, S, M = 4, 128, 16, 32

    key = jax.random.PRNGKey(0)
    k1, k2, k3, kp = jax.random.split(key, 4)
    x1 = jax.random.normal(k1, (S, D), jnp.float32)
    x2 = jax.random.normal(k2, (N, M, D), jnp.float32)
    x3 = jax.random.normal(k3, (N, S, D), jnp.float32)
    params = init_params(kp, D)

    ref = reference_forward(x1, x2, x3, params, N)

    # f32 path (exact math; folded W23 differs only by rounding): tight check.
    out_f32 = jax.block_until_ready(
        model_forward(x1, x2, x3, params, N, compute_dtype=jnp.float32))
    assert out_f32.shape == (N, M, D)
    assert jnp.allclose(out_f32, ref, atol=1e-4, rtol=1e-4), \
        "f32 mismatch vs pure-JAX reference"

    # default bf16 MXU-operand path (f32 softmax + accumulation): loose check.
    out_bf = jax.block_until_ready(model_forward(x1, x2, x3, params, N))
    max_err = float(jnp.max(jnp.abs(out_bf - ref)))
    assert max_err < 0.1, f"bf16 fast path error too large: {max_err}"

    print("KERNEL_OK")
</pallas_src>

<mosaic_0001>
module attributes {stable_mosaic.version = 11 : i64} {
  func.func @_fused_kernel(%arg0: i32, %arg1: memref<16x128xf32, #tpu.memory_space<vmem>>, %arg2: memref<128x128xf32, #tpu.memory_space<vmem>>, %arg3: memref<1x128xf32, #tpu.memory_space<vmem>>, %arg4: memref<2x32x128xf32, #tpu.memory_space<vmem>>, %arg5: memref<2x16x128xf32, #tpu.memory_space<vmem>>, %arg6: memref<128x128xf32, #tpu.memory_space<vmem>>, %arg7: memref<1x128xf32, #tpu.memory_space<vmem>>, %arg8: memref<2x32x128xf32, #tpu.memory_space<vmem>>) attributes {dimension_semantics = [#tpu.dimension_semantics<parallel>], iteration_bounds = array<i64: 2>, scalar_prefetch = 0 : i64, scratch_operands = 0 : i64, tpu.core_type = #tpu.core_type<tc>, window_params = [{pipeline_mode = #tpu.pipeline_mode<synchronous>, transform_indices = @transform_0, window_bounds = array<i64: 16, 128>}, {pipeline_mode = #tpu.pipeline_mode<synchronous>, transform_indices = @transform_1, window_bounds = array<i64: 128, 128>}, {pipeline_mode = #tpu.pipeline_mode<synchronous>, transform_indices = @transform_2, window_bounds = array<i64: 1, 128>}, {transform_indices = @transform_3, window_bounds = array<i64: 2, 32, 128>}, {transform_indices = @transform_4, window_bounds = array<i64: 2, 16, 128>}, {pipeline_mode = #tpu.pipeline_mode<synchronous>, transform_indices = @transform_5, window_bounds = array<i64: 128, 128>}, {pipeline_mode = #tpu.pipeline_mode<synchronous>, transform_indices = @transform_6, window_bounds = array<i64: 1, 128>}, {transform_indices = @transform_7, window_bounds = array<i64: 2, 32, 128>}]} {
    %c0 = arith.constant 0 : index
    %c0_0 = arith.constant 0 : index
    %0 = vector.load %arg1[%c0, %c0_0] : memref<16x128xf32, #tpu.memory_space<vmem>>, vector<16x128xf32>
    %c0_1 = arith.constant 0 : index
    %c0_2 = arith.constant 0 : index
    %1 = vector.load %arg2[%c0_1, %c0_2] : memref<128x128xf32, #tpu.memory_space<vmem>>, vector<128x128xf32>
    %cst = arith.constant dense<0.000000e+00> : vector<16x128xf32>
    %2 = tpu.matmul %0, %1, %cst {dimension_numbers = #tpu.dot_dimension_numbers<[1], [0], [0], [1], [0, 0, 1, 1], [], []>} : vector<16x128xf32>, vector<128x128xf32>, vector<16x128xf32> -> vector<16x128xf32>
    %c0_3 = arith.constant 0 : index
    %c0_4 = arith.constant 0 : index
    %3 = vector.load %arg3[%c0_3, %c0_4] : memref<1x128xf32, #tpu.memory_space<vmem>>, vector<1x128xf32>
    %4 = vector.broadcast %3 : vector<1x128xf32> to vector<16x128xf32>
    %5 = arith.addf %2, %4 : vector<16x128xf32>
    %c0_5 = arith.constant 0 : index
    %c0_6 = arith.constant 0 : index
    %c0_7 = arith.constant 0 : index
    %6 = vector.load %arg4[%c0_5, %c0_6, %c0_7] : memref<2x32x128xf32, #tpu.memory_space<vmem>>, vector<2x32x128xf32>
    %7 = vector.shape_cast %6 : vector<2x32x128xf32> to vector<64x128xf32>
    %cst_8 = arith.constant dense<0.000000e+00> : vector<64x16xf32>
    %8 = tpu.matmul %7, %5, %cst_8 {dimension_numbers = #tpu.dot_dimension_numbers<[1], [1], [0], [0], [0, 0, 1, 0], [], []>} : vector<64x128xf32>, vector<16x128xf32>, vector<64x16xf32> -> vector<64x16xf32>
    %cst_9 = arith.constant dense<0xFF800000> : vector<64xf32>
    %9 = vector.multi_reduction <maximumf>, %8, %cst_9 [1] : vector<64x16xf32> to vector<64xf32>
    %10 = vector.shape_cast %9 : vector<64xf32> to vector<64x1xf32>
    %11 = vector.broadcast %10 : vector<64x1xf32> to vector<64x16xf32>
    %12 = arith.subf %8, %11 : vector<64x16xf32>
    %13 = math.exp %12 : vector<64x16xf32>
    %cst_10 = arith.constant dense<0.000000e+00> : vector<64xf32>
    %14 = vector.multi_reduction <add>, %13, %cst_10 [1] : vector<64x16xf32> to vector<64xf32>
    %15 = vector.shape_cast %14 : vector<64xf32> to vector<64x1xf32>
    %16 = tpu.reciprocal %15 : vector<64x1xf32> -> vector<64x1xf32>
    %17 = vector.broadcast %16 : vector<64x1xf32> to vector<64x16xf32>
    %18 = arith.mulf %13, %17 : vector<64x16xf32>
    %19 = vector.shape_cast %18 : vector<64x16xf32> to vector<2x32x16xf32>
    %c0_11 = arith.constant 0 : index
    %c0_12 = arith.constant 0 : index
    %c0_13 = arith.constant 0 : index
    %20 = vector.load %arg5[%c0_11, %c0_12, %c0_13] : memref<2x16x128xf32, #tpu.memory_space<vmem>>, vector<2x16x128xf32>
    "tpu.trace_start"() <{level = 10 : i32, message = "bms,bsd->bmd"}> : () -> ()
    %cst_14 = arith.constant dense<0.000000e+00> : vector<2x32x128xf32>
    %21 = tpu.matmul %19, %20, %cst_14 {dimension_numbers = #tpu.dot_dimension_numbers<[2], [1], [1], [2], [0, 0, 0, 1, 1, 2], [0], [0]>} : vector<2x32x16xf32>, vector<2x16x128xf32>, vector<2x32x128xf32> -> vector<2x32x128xf32>
    "tpu.trace_stop"() : () -> ()
    %22 = vector.shape_cast %21 : vector<2x32x128xf32> to vector<64x128xf32>
    %c0_15 = arith.constant 0 : index
    %c0_16 = arith.constant 0 : index
    %23 = vector.load %arg6[%c0_15, %c0_16] : memref<128x128xf32, #tpu.memory_space<vmem>>, vector<128x128xf32>
    %cst_17 = arith.constant dense<0.000000e+00> : vector<64x128xf32>
    %24 = tpu.matmul %22, %23, %cst_17 {dimension_numbers = #tpu.dot_dimension_numbers<[1], [0], [0], [1], [0, 0, 1, 1], [], []>} : vector<64x128xf32>, vector<128x128xf32>, vector<64x128xf32> -> vector<64x128xf32>
    %c0_18 = arith.constant 0 : index
    %c0_19 = arith.constant 0 : index
    %25 = vector.load %arg7[%c0_18, %c0_19] : memref<1x128xf32, #tpu.memory_space<vmem>>, vector<1x128xf32>
    %26 = vector.broadcast %25 : vector<1x128xf32> to vector<64x128xf32>
    %27 = arith.addf %24, %26 : vector<64x128xf32>
    %28 = vector.shape_cast %27 : vector<64x128xf32> to vector<2x32x128xf32>
    %c0_20 = arith.constant 0 : index
    %c0_21 = arith.constant 0 : index
    %c0_22 = arith.constant 0 : index
    %29 = vector.load %arg8[%c0_20, %c0_21, %c0_22] : memref<2x32x128xf32, #tpu.memory_space<vmem>>, vector<2x32x128xf32>
    tpu.vector_store %arg8[%c0_20, %c0_21, %c0_22], %28 {strides = array<i32>} : memref<2x32x128xf32, #tpu.memory_space<vmem>>, vector<2x32x128xf32>,
    return
  }
  func.func @transform_0(%arg0: i32) -> (i32, i32) {
    %c0_i32 = arith.constant 0 : i32
    %c0_i32_0 = arith.constant 0 : i32
    %c0_i32_1 = arith.constant 0 : i32
    return %c0_i32, %c0_i32_0 : i32, i32
  }
  func.func @transform_1(%arg0: i32) -> (i32, i32) {
    %c0_i32 = arith.constant 0 : i32
    %c0_i32_0 = arith.constant 0 : i32
    %c0_i32_1 = arith.constant 0 : i32
    return %c0_i32, %c0_i32_0 : i32, i32
  }
  func.func @transform_2(%arg0: i32) -> (i32, i32) {
    %c0_i32 = arith.constant 0 : i32
    %c0_i32_0 = arith.constant 0 : i32
    %c0_i32_1 = arith.constant 0 : i32
    return %c0_i32, %c0_i32_0 : i32, i32
  }
  func.func @transform_3(%arg0: i32) -> (i32, i32, i32) {
    %c0_i32 = arith.constant 0 : i32
    %c0_i32_0 = arith.constant 0 : i32
    %c0_i32_1 = arith.constant 0 : i32
    return %arg0, %c0_i32, %c0_i32_0 : i32, i32, i32
  }
  func.func @transform_4(%arg0: i32) -> (i32, i32, i32) {
    %c0_i32 = arith.constant 0 : i32
    %c0_i32_0 = arith.constant 0 : i32
    %c0_i32_1 = arith.constant 0 : i32
    return %arg0, %c0_i32, %c0_i32_0 : i32, i32, i32
  }
  func.func @transform_5(%arg0: i32) -> (i32, i32) {
    %c0_i32 = arith.constant 0 : i32
    %c0_i32_0 = arith.constant 0 : i32
    %c0_i32_1 = arith.constant 0 : i32
    return %c0_i32, %c0_i32_0 : i32, i32
  }
  func.func @transform_6(%arg0: i32) -> (i32, i32) {
    %c0_i32 = arith.constant 0 : i32
    %c0_i32_0 = arith.constant 0 : i32
    %c0_i32_1 = arith.constant 0 : i32
    return %c0_i32, %c0_i32_0 : i32, i32
  }
  func.func @transform_7(%arg0: i32) -> (i32, i32, i32) {
    %c0_i32 = arith.constant 0 : i32
    %c0_i32_0 = arith.constant 0 : i32
    %c0_i32_1 = arith.constant 0 : i32
    return %arg0, %c0_i32, %c0_i32_0 : i32, i32, i32
  }
}

</mosaic_0001>

<bundles_post_ra>
// kernel: tpu_custom_call.1
= control target key start
LH: loop header
LB: loop body
LE: loop exit
PB: predicated region body
PF: predicated region fallthrough
CT: control target
= control target key end

     0   :  { %s2236_s0 = inlined_call_operand.hbm [shape: f32[16,128], index: 0, kind: input, shape index: {}]   ;;  %s2237_s1 = inlined_call_operand.hbm [shape: f32[128,128], index: 1, kind: input, shape index: {}]   ;;  %s2238_s2 = inlined_call_operand.vmem [shape: f32[1,128], index: 2, kind: input, shape index: {}]   ;;  %s2239_s3 = inlined_call_operand.hbm [shape: f32[4,32,128], index: 3, kind: input, shape index: {}]   ;;  %s2240_s4 = inlined_call_operand.hbm [shape: f32[4,16,128], index: 4, kind: input, shape index: {}]   ;;  %s2241_s5 = inlined_call_operand.hbm [shape: f32[128,128], index: 5, kind: input, shape index: {}]   ;;  %s2242_s6 = inlined_call_operand.vmem [shape: f32[1,128], index: 6, kind: input, shape index: {}]   ;;  %s2243_s7 = inlined_call_operand.hbm [shape: f32[4,32,128], index: 7, kind: output, shape index: {}]  }
   0x1   :  { %2257 = sst [smem:[#allocation19_spill]] %s2236_s0 }
   0x2   :  { %2258 = sst [smem:[#allocation20_spill]] %s2237_s1 }
   0x3   :  { %2259 = sst [smem:[#allocation21_spill]] %s2239_s3 }
   0x4   :  { %12 = vsyncpa [#allocation3], 0 }
   0x5   :  { %13 = vsyncpa [#allocation6], 0 }
   0x6   :  { %14 = vsyncpa [#allocation4], 0 }
   0x7   :  { %16 = vsyncpa [#allocation4 + $0x1], 0  ;;  %s1842_s24 = smov 0   ;;  %s1844_s25 = smov 0  }
   0x8   :  { %s1846_s26 = smov 0   ;;  %s1848_s27 = smov 0  }
   0x9 LB: > { %s1863_s28 = sadd.s32 4294967295, %s1790_s27   ;;  %s1152_s29 = sadd.s32 4294967294, %s1790_s27   ;;  %s1790_s27 = sphi %s1848_s27, %s2294_s27   ;;  %s1786_s26 = sphi %s1846_s26, %s2298_s26   ;;  %s1782_s25 = sphi %s1844_s25, %s2297_s25   ;;  %s1778_s24 = sphi %s1842_s24, %s2296_s24  }
   0xa   : > { %s1867_s30 = sadd.s32 1, %s1790_s27   ;;  %s92_s8 = sadd.s32 1, %s1786_s26 }
   0xb   : > { %2260 = sst [smem:[#allocation16_spill]] %s1867_s30  ;;  %s89_s9 = ssub.s32 %s1790_s27, %s1867_s30 }
   0xc   : > { %p99_p0 = scmp.ne.s32.totalorder %s1786_s26, %s1782_s25  ;;  %p90_p1 = scmp.eq.s32.totalorder %s89_s9, 0 }
   0xd   : > { %p100_p2 = scmp.eq.s32.totalorder %s1790_s27, 0  ;;  %p105_p3 = scmp.ne.s32.totalorder %s1782_s25, %s1778_s24 }
   0xe   : > { %p2244_p4 = scmp.eq.s32.totalorder %s1863_s28, 0  ;;  %p197_p7 = scmp.eq.s32.totalorder %s1863_s28, 1 }
   0xf   : > { %s1879_s10 = scalar_select %p90_p1, %s1786_s26, %s92_s8  }
  0x10   : > { %p1881_p5 = por %p100_p2, %p99_p0  ;;  %p1887_p6 = por %p2244_p4, %p105_p3 }
  0x11   : > { %2261 = sst [smem:[#allocation17_spill]] %s1879_s10  ;;  %p203_p8 = scmp.eq.s32.totalorder %s1152_s29, 1 }
  0x12   : > { %s2262_s11 = scalar_select %p1881_p5, 1, 0 }
  0x13   : > { %s2263_s12 = scalar_select %p1887_p6, 1, 0 }
  0x14   : > { %p1153_p9 = scmp.ge.s32.totalorder %s1790_s27, 1  ;;  %p210_p10 = scmp.lt.s32.totalorder %s1790_s27, 3 }
  0x15   : > { %p1894_p11 = por %p197_p7, %p99_p0  ;;  %p1898_p12 = por %p203_p8, %p105_p3 }
  0x16   : > { %p1902_p13 = pnand %p1153_p9, %p210_p10  ;;  %s1792_s16 = smov [#allocation2]  }
  0x17   : > { %s2264_s13 = scalar_select %p1894_p11, 1, 0 }
  0x18   : > { %s2265_s14 = scalar_select %p1898_p12, 1, 0 }
  0x19   : > { %s2267_s15 = scalar_select %p1902_p13, 1, 0 }
  0x1a   : > { %2266 = sst [smem:[#allocation18_spill]] %s2265_s14  ;;  %p1468_p1 = pneg %p1902_p13 }
  0x1b   : > { %s222_s17 = sshll.u32 %s1792_s16, 4  ;;  %s1793_s19 = smov [#allocation5]   ;;  %s223_s17 = int_to_ptr.vmem [resolvable:$true] %s222_s17 }
  0x1c   : > { %p1910_p2 = pnand %p1468_p1, %p2244_p4  ;;  %s235_s20 = sshll.u32 %s1793_s19, 4  ;;  %s236_s20 = int_to_ptr.vmem [resolvable:$true] %s235_s20 }
  0x1d   : > { %s2269_s0 = sld [smem:[#allocation19_spill]] }
  0x1e   : > { %s2268_s18 = scalar_select %p1910_p2, 1, 0 }
  0x1f   : > { %p1924_p8 = pneg %p1910_p2 }
  0x23   : > { %s1568_s23 = scalar_lea.hbm %s2269_s0, 256 }
  0x24   : > { %p1569_p7 = scmp.ne.s32.totalorder %s2269_s0, %s1568_s23  ;;  %p1575_p1 = scmp.lt.u32.totalorder %s1568_s23, %s2269_s0 }
  0x26   : > { %p1571_p9 = pnand %p1924_p8, %p1569_p7 }
  0x28   : > { %p1572_p10 = pneg %p1571_p9 }
  0x2a   : > { %p1577_p0 = pnand %p1575_p1, %p1572_p10 }
  0x2c   : > { %1580 = shalt.err (!%p1577_p0)
}
  0x2d   : > { %s1581_s19 = scalar_lea.vmem %s223_s17, 256  ;;  %p1589_p11 = scmp.lt.s32.totalorder %s223_s17, %s223_s17 }
  0x2e   : > { %p1582_p4 = scmp.ne.s32.totalorder %s223_s17, %s1581_s19  ;;  %p1590_p6 = scmp.lt.s32.totalorder %s1581_s19, %s1581_s19 }
  0x30   : > { %p1584_p3 = pnand %p1582_p4, %p1924_p8  ;;  %p1591_p13 = por %p1590_p6, %p1589_p11 }
  0x32   : > { %p1585_p12 = pneg %p1584_p3 }
  0x34   : > { %p1592_p5 = pnand %p1591_p13, %p1585_p12 }
  0x36   : > { %1595 = shalt.err (!%p1592_p5)
}
  0x37   : > { %s2252_s21 = smov 128   ;;  %s1795_s10 = smov 8  }
  0x38   : > { %1471 = dma.hbm_to_vmem [thread:$0]  (!%p1910_p2), %s2269_s0, 256, %s223_s17, [#allocation3], %s2252_s21, %s2252_s21, %s1795_s10  }
  0x39   : > { %p2271_p4 = scmp.ne.s32.totalorder %s2262_s11, 0  ;;  %p2272_p0 = scmp.lt.s32.totalorder %s1790_s27, 2 }
  0x3a   : > { %s2274_s1 = sld [smem:[#allocation20_spill]] }
  0x3b   : > { %p1947_p3 = pnand %p2272_p0, %p2271_p4 }
  0x3d   : > { %s2273_s29 = scalar_select %p1947_p3, 1, 0 }
  0x40   : > { %s1596_s19 = scalar_lea.hbm %s2274_s1, 2048 }
  0x41   : > { %p1597_p5 = scmp.ne.s32.totalorder %s2274_s1, %s1596_s19  ;;  %p1603_p12 = scmp.lt.u32.totalorder %s1596_s19, %s2274_s1 }
  0x43   : > { %p1599_p6 = pnand %p1597_p5, %p1924_p8 }
  0x45   : > { %p1600_p11 = pneg %p1599_p6 }
  0x47   : > { %p1605_p13 = pnand %p1603_p12, %p1600_p11 }
  0x49   : > { %1608 = shalt.err (!%p1605_p13)
}
  0x4a   : > { %s1609_s11 = scalar_lea.vmem %s236_s20, 2048  ;;  %p1617_p1 = scmp.lt.s32.totalorder %s236_s20, %s236_s20 }
  0x4b   : > { %p1610_p7 = scmp.ne.s32.totalorder %s236_s20, %s1609_s11  ;;  %p1618_p4 = scmp.lt.s32.totalorder %s1609_s11, %s1609_s11 }
  0x4d   : > { %p1612_p9 = pnand %p1610_p7, %p1924_p8  ;;  %p1619_p0 = por %p1618_p4, %p1617_p1 }
  0x4f   : > { %p1613_p10 = pneg %p1612_p9 }
  0x51   : > { %p1620_p3 = pnand %p1619_p0, %p1613_p10 }
  0x53   : > { %1623 = shalt.err (!%p1620_p3)
}
  0x54   : > { %1474 = dma.hbm_to_vmem [thread:$0]  (!%p1910_p2), %s2274_s1, 2048, %s236_s20, [#allocation6], %s2252_s21, %s2252_s21, %s1795_s10  }
  0x55   : > { %s268_s23 = sand.u32 1, %s1790_s27   ;;  %s2254_s8 = sand.u32 1, %s1786_s26  }
  0x56   : > { %s1158_s16 = sshll.u32 %s2254_s8, 6  ;;  %s1190_s19 = sshll.u32 %s1790_s27, 10 }
  0x57   : > { %s2275_s3 = sld [smem:[#allocation21_spill]]  ;;  %s272_s30 = scalar_lea.vmem [#allocation7], %s1158_s16 }
  0x58   : > { %s280_s14 = sshll.u32 %s272_s30, 4  ;;  %s1796_s0 = smov [#allocation9]   ;;  %s1982_s14 = int_to_ptr.vmem [resolvable:$true] %s280_s14 }
  0x59   : > { %s1984_s20 = sshll.u32 %s1796_s0, 4  ;;  %s1986_s21 = scalar_lea.sflag [#allocation3], %s268_s23  ;;  %s252_s20 = int_to_ptr.vmem [resolvable:$true] %s1984_s20 }
  0x5a   : > { %p2276_p5 = scmp.ne.s32.totalorder %s2273_s29, 0 }
  0x5c   : > { %p2256_p6 = pneg %p2276_p5 }
  0x5d   : > { %s1980_s11 = scalar_lea.hbm %s2275_s3, %s1190_s19  ;;  %s1629_s16 = scalar_lea.hbm %s2275_s3, 2048 }
  0x5e   : > { %s1624_s8 = scalar_lea.hbm %s1980_s11, 1024  ;;  %p1630_p13 = scmp.lt.u32.totalorder %s1980_s11, %s2275_s3 }
  0x5f   : > { %p1625_p3 = scmp.ne.s32.totalorder %s1980_s11, %s1624_s8  ;;  %p1631_p7 = scmp.lt.u32.totalorder %s1629_s16, %s1624_s8 }
  0x60   : > { %p1633_p10 = scmp.lt.u32.totalorder %s1624_s8, %s1980_s11 }
  0x61   : > { %p1627_p11 = pnand %p2256_p6, %p1625_p3  ;;  %p1632_p9 = por %p1631_p7, %p1630_p13 }
  0x63   : > { %p1628_p12 = pneg %p1627_p11  ;;  %p1634_p1 = por %p1633_p10, %p1632_p9 }
  0x65   : > { %p1635_p4 = pnand %p1634_p1, %p1628_p12 }
  0x67   : > { %1638 = shalt.err (!%p1635_p4)
}
  0x68   : > { %s1639_s0 = scalar_lea.vmem %s1982_s14, 1024  ;;  %s1797_s23 = smov [#allocation7]  }
  0x69   : > { %p1640_p0 = scmp.ne.s32.totalorder %s1982_s14, %s1639_s0  ;;  %s1644_s19 = sshll.u32 %s1797_s23, 4  ;;  %s1645_s19 = int_to_ptr.vmem [resolvable:$false] %s1644_s19 }
  0x6a   : > { %s1646_s22 = scalar_lea.vmem %s1645_s19, 2048  ;;  %p1647_p2 = scmp.lt.s32.totalorder %s1982_s14, %s1645_s19 }
  0x6b   : > { %p1642_p3 = pnand %p1640_p0, %p2256_p6  ;;  %p1648_p13 = scmp.lt.s32.totalorder %s1646_s22, %s1639_s0 }
  0x6d   : > { %p1643_p11 = pneg %p1642_p3  ;;  %p1649_p7 = por %p1648_p13, %p1647_p2 }
  0x6f   : > { %p1650_p9 = pnand %p1649_p7, %p1643_p11 }
  0x71   : > { %1653 = shalt.err (!%p1650_p9)
}
  0x72   : > { %s2277_s8 = smov 128   ;;  %s2278_s16 = sand.u32 1, %s1786_s26  }
  0x73   : > { %1481 = dma.hbm_to_vmem [thread:$0]  (!%p2276_p5), %s1980_s11, 1024, %s1982_s14, %s1986_s21, %s2277_s8, %s2277_s8, %s1795_s10  }
  0x74   : > { %s1162_s17 = sshll.u32 %s2278_s16, 5  ;;  %s1654_s23 = scalar_lea.hbm %s2241_s5, 2048 }
  0x75   : > { %p1655_p2 = scmp.ne.s32.totalorder %s2241_s5, %s1654_s23  ;;  %p1661_p1 = scmp.lt.u32.totalorder %s1654_s23, %s2241_s5 }
  0x77   : > { %p1657_p12 = pnand %p1655_p2, %p1924_p8 }
  0x79   : > { %p1658_p10 = pneg %p1657_p12 }
  0x7b   : > { %p1663_p4 = pnand %p1661_p1, %p1658_p10 }
  0x7d   : > { %1666 = shalt.err (!%p1663_p4)
}
  0x7e   : > { %s1667_s11 = scalar_lea.vmem %s252_s20, 2048  ;;  %p1675_p13 = scmp.lt.s32.totalorder %s252_s20, %s252_s20 }
  0x7f   : > { %p1668_p0 = scmp.ne.s32.totalorder %s252_s20, %s1667_s11  ;;  %p1676_p7 = scmp.lt.s32.totalorder %s1667_s11, %s1667_s11 }
  0x81   : > { %p1670_p3 = pnand %p1668_p0, %p1924_p8  ;;  %p1677_p9 = por %p1676_p7, %p1675_p13 }
  0x83   : > { %p1671_p11 = pneg %p1670_p3 }
  0x85   : > { %p1678_p6 = pnand %p1677_p9, %p1671_p11 }
  0x87   : > { %1681 = shalt.err (!%p1678_p6)
}
  0x88   : > { %p2279_p2 = scmp.ne.s32.totalorder %s2268_s18, 0  ;;  %s1192_s14 = sshll.u32 %s1790_s27, 9 }
  0x89   : > { %s2045_s30 = scalar_lea.hbm %s2240_s4, %s1192_s14  ;;  %s294_s18 = scalar_lea.vmem [#allocation8], %s1162_s17 }
  0x8a   : > { %1477 = dma.hbm_to_vmem [thread:$0]  (!%p2279_p2), %s2241_s5, 2048, %s252_s20, [#allocation6], %s2277_s8, %s2277_s8, %s1795_s10  }
  0x8b   : > { %s302_s0 = sshll.u32 %s294_s18, 4  ;;  %s1682_s23 = scalar_lea.hbm %s2045_s30, 512  ;;  %s2047_s0 = int_to_ptr.vmem [resolvable:$true] %s302_s0 }
  0x8c   : > { %p1683_p8 = scmp.ne.s32.totalorder %s2045_s30, %s1682_s23  ;;  %p2280_p6 = pneg %p2276_p5 }
  0x8d   : > { %s1687_s22 = scalar_lea.hbm %s2240_s4, 1024  ;;  %p1688_p1 = scmp.lt.u32.totalorder %s2045_s30, %s2240_s4 }
  0x8e   : > { %p1685_p12 = pnand %p1683_p8, %p2280_p6  ;;  %p1689_p4 = scmp.lt.u32.totalorder %s1687_s22, %s1682_s23 }
  0x8f   : > { %p1691_p3 = scmp.lt.u32.totalorder %s1682_s23, %s2045_s30 }
  0x90   : > { %p1686_p10 = pneg %p1685_p12  ;;  %p1690_p0 = por %p1689_p4, %p1688_p1 }
  0x92   : > { %p1692_p11 = por %p1691_p3, %p1690_p0 }
  0x94   : > { %p1693_p13 = pnand %p1692_p11, %p1686_p10 }
  0x96   : > { %1696 = shalt.err (!%p1693_p13)
}
  0x97   : > { %s1697_s17 = scalar_lea.vmem %s2047_s0, 512  ;;  %p2281_p9 = pmov %p2280_p6 }
  0x98   : > { %p1698_p7 = scmp.ne.s32.totalorder %s2047_s0, %s1697_s17  ;;  %s1798_s3 = smov [#allocation8]  }
  0x99   : > { %s1702_s14 = sshll.u32 %s1798_s3, 4  ;;  %s1703_s14 = int_to_ptr.vmem [resolvable:$false] %s1702_s14 }
  0x9a   : > { %p1700_p2 = pnand %p1698_p7, %p2281_p9  ;;  %s1704_s9 = scalar_lea.vmem %s1703_s14, 1024 }
  0x9b   : > { %p1705_p6 = scmp.lt.s32.totalorder %s2047_s0, %s1703_s14  ;;  %p1706_p12 = scmp.lt.s32.totalorder %s1704_s9, %s1697_s17 }
  0x9c   : > { %p1701_p8 = pneg %p1700_p2 }
  0x9d   : > { %p1707_p1 = por %p1706_p12, %p1705_p6 }
  0x9f   : > { %p1708_p4 = pnand %p1707_p1, %p1701_p8 }
  0xa1   : > { %1711 = shalt.err (!%p1708_p4)
}
  0xa2   : > { %1484 = dma.hbm_to_vmem [thread:$0]  (!%p2276_p5), %s2045_s30, 512, %s2047_s0, %s1986_s21, %s2277_s8, %s2277_s8, %s1795_s10  }
  0xa3   : > { %p2282_p10 = scmp.ne.s32.totalorder %s2267_s15, 0 }
  0xa4   : > { %p2283_p0 = scmp.eq.s32.totalorder (!%p2282_p10), %s1863_s28, 0 }
  0xa5   : > { %314 = sbr.rel (%p2282_p10) target bundleno = 1431 (0x597), region = 48 }
  0xac   : > { %1757 = dma.done.wait (%p2283_p0), [#allocation3], 256   ;;  %p2284_p3 = pmov %p2283_p0 }
  0xad   : > { %p2285_p11 = pmov %p2283_p0 }
  0xae   : > { %1759 = vsyncadd (%p2284_p3), [#allocation3], 4294967040 }
  0xaf   : > { %1761 = dma.done.wait (%p2285_p11), [#allocation6], 2048   ;;  %p2286_p13 = pmov %p2283_p0 }
  0xb0   : > { %s324_s29 = sand.u32 1, %s1863_s28   ;;  %s2088_s21 = sand.u32 1, %s1782_s25  }
  0xb1   : > { %1763 = vsyncadd (%p2286_p13), [#allocation6], 4294965248  ;;  %s1169_s15 = sshll.u32 %s2088_s21, 6  ;;  %s325_s10 = scalar_lea.sflag [#allocation3], %s324_s29 }
  0xb2   : > { %s2093_s8 = scalar_lea.vmem [#allocation7], %s1169_s15  ;;  %p2287_p5 = scmp.ne.s32.totalorder %s2263_s12, 0 }
  0xb4   : > { %1765 = dma.done.wait (%p2287_p5), %s325_s10, 1536  }
  0xb5   : > { %1767 = vsyncadd (%p2287_p5), %s325_s10, 4294965760  ;;  %s1170_s16 = sshll.u32 %s2088_s21, 5  ;;  %p2288_p7 = pmov %p2283_p0 }
  0xb6   : > { %s2100_s30 = scalar_lea.vmem [#allocation8], %s1170_s16 }
  0xb7   : > { %1769 = dma.done.wait (%p2288_p7), [#allocation6], 2048   ;;  %p2289_p9 = pmov %p2283_p0 }
  0xb8   : > { %v382_v0 = vld [vmem:[#allocation5] sm:$0xff]  ;;  %v383_v1 = vld [vmem:[#allocation5 + $0x8] sm:$0xff]  ;;  %v384_v2 = vld [vmem:[#allocation5 + $0x10] sm:$0xff]  ;;  %vm593_vm0 = vcmask 130048   ;;  %s376_s20 = scalar_lea.vmem [#allocation10], %s1169_s15  ;;  %s1194_s22 = sshll.u32 %s1863_s28, 10 }
  0xb9   : > { %1771 = vsyncadd (%p2289_p9), [#allocation6], 4294965248  ;;  %v1374_v3 = vpack.c.bf16 %v383_v1, %v382_v0  ;;  %v385_v4 = vld [vmem:[#allocation5 + $0x18] sm:$0xff]  ;;  %v386_v6 = vld [vmem:[#allocation5 + $0x20] sm:$0xff]  ;;  %s1031_s19 = sshll.u32 %s376_s20, 4  ;;  %s2192_s17 = scalar_lea.hbm %s2243_s7, %s1194_s22  ;;  %s2187_s19 = int_to_ptr.vmem [resolvable:$true] %s1031_s19 }
  0xba   : > { %v1378_v5 = vpack.c.bf16 %v385_v4, %v384_v2  ;;  %v387_v7 = vld [vmem:[#allocation5 + $0x28] sm:$0xff]  ;;  %v380_v9 = vld [vmem:[#allocation2] sm:$0xff]  ;;  %v389_v11 = vld [vmem:[#allocation5 + $0x38] sm:$0xff]  ;;  %s1017_s3 = scalar_lea.sflag [#allocation4], %s2088_s21  ;;  %s1712_s28 = scalar_lea.vmem %s2187_s19, 1024 }
  0xbb   : > { %1375 = vmatprep.subr.bf16.mxu1 %v1374_v3  ;;  %v1382_v8 = vpack.c.bf16 %v387_v7, %v386_v6  ;;  %v388_v10 = vld [vmem:[#allocation5 + $0x30] sm:$0xff]  ;;  %1291 = vmatprep.mubr.f32.mxu1 %v380_v9  ;;  %v390_v13 = vld [vmem:[#allocation5 + $0x40] sm:$0xff]  ;;  %v391_v14 = vld [vmem:[#allocation5 + $0x48] sm:$0xff]  ;;  %p1713_p2 = scmp.ne.s32.totalorder %s2187_s19, %s1712_s28  ;;  %p2290_p8 = scmp.ne.s32.totalorder %s2264_s13, 0 }
  0xbc   : > { %1377 = vmatpush3.bf16.msra.mxu1 %v1374_v3  ;;  %v1386_v12 = vpack.c.bf16 %v389_v11, %v388_v10  ;;  %v1390_v15 = vpack.c.bf16 %v391_v14, %v390_v13  ;;  %v392_v16 = vld [vmem:[#allocation5 + $0x50] sm:$0xff]  ;;  %v393_v17 = vld [vmem:[#allocation5 + $0x58] sm:$0xff]  ;;  %v394_v19 = vld [vmem:[#allocation5 + $0x60] sm:$0xff]  ;;  %s1799_s14 = smov [#allocation10]  }
  0xbd   : > { %1379 = vmatprep.subr.bf16.mxu1 %v1378_v5  ;;  %v1394_v18 = vpack.c.bf16 %v393_v17, %v392_v16  ;;  %v395_v20 = vld [vmem:[#allocation5 + $0x68] sm:$0xff]  ;;  %v396_v22 = vld [vmem:[#allocation5 + $0x70] sm:$0xff]  ;;  %v397_v23 = vld [vmem:[#allocation5 + $0x78] sm:$0xff]  ;;  %p1714_p6 = pnand %p1713_p2, %p2290_p8  ;;  %s1716_s9 = sshll.u32 %s1799_s14, 4  ;;  %s1717_s9 = int_to_ptr.vmem [resolvable:$false] %s1716_s9 }
  0xbe   : > { %v1398_v21 = vpack.c.bf16 %v395_v20, %v394_v19  ;;  %v1402_v24 = vpack.c.bf16 %v397_v23, %v396_v22  ;;  %v381_v25 = vld [vmem:[#allocation2 + $0x8] sm:$0xff]  ;;  %v480_v26 = vld [vmem:[%s2093_s8] sm:$0xff]  ;;  %v1173_v27 = vld [vmem:[%s2238_s2] ss:$0 sm:$0xff]  ;;  %s1718_s29 = scalar_lea.vmem %s1717_s9, 2048  ;;  %p1719_p1 = scmp.lt.s32.totalorder %s2187_s19, %s1717_s9 }
  0xbf   : > { %1298 = vmatprep.mubr.f32.mxu0 %v480_v26  ;;  %v481_v33 = vld [vmem:[%s2093_s8 + $0x8] sm:$0xff]  ;;  %v482_v34 = vld [vmem:[%s2093_s8 + $0x10] sm:$0xff]  ;;  %v483_v35 = vld [vmem:[%s2093_s8 + $0x18] sm:$0xff]  ;;  %p1715_p12 = pneg %p1714_p6  ;;  %p1720_p4 = scmp.lt.s32.totalorder %s1718_s29, %s1712_s28 }
  0xc0   : > { %1381 = vmatpush3.bf16.msra.mxu1 %v1378_v5  ;;  %v484_v36 = vld [vmem:[%s2093_s8 + $0x20] sm:$0xff]  ;;  %v485_v37 = vld [vmem:[%s2093_s8 + $0x28] sm:$0xff]  ;;  %v486_v38 = vld [vmem:[%s2093_s8 + $0x30] sm:$0xff] }
  0xc1   : > { %1383 = vmatprep.subr.bf16.mxu1 %v1382_v8  ;;  %v487_v39 = vld [vmem:[%s2093_s8 + $0x38] sm:$0xff]  ;;  %p1721_p10 = por %p1720_p4, %p1719_p1 }
  0xc3   : > { %p1722_p0 = pnand %p1721_p10, %p1715_p12 }
  0xc4   : > { %1385 = vmatpush3.bf16.msra.mxu1 %v1382_v8 }
  0xc5   : > { %1387 = vmatprep.subr.bf16.mxu1 %v1386_v12 }
  0xc8   : > { %1389 = vmatpush3.bf16.msra.mxu1 %v1386_v12 }
  0xc9   : > { %1391 = vmatprep.subr.bf16.mxu1 %v1390_v15 }
  0xcc   : > { %1393 = vmatpush3.bf16.msra.mxu1 %v1390_v15 }
  0xcd   : > { %1395 = vmatprep.subr.bf16.mxu1 %v1394_v18 }
  0xd0   : > { %1397 = vmatpush3.bf16.msra.mxu1 %v1394_v18 }
  0xd1   : > { %1399 = vmatprep.subr.bf16.mxu1 %v1398_v21 }
  0xd4   : > { %1401 = vmatpush3.bf16.msra.mxu1 %v1398_v21 }
  0xd5   : > { %1403 = vmatprep.subr.bf16.mxu1 %v1402_v24 }
  0xd8   : > { %1405 = vmatpush3.bf16.msra.mxu1 %v1402_v24 }
  0xdb   : > { %1292 = vmatmul.mubr.f32.vlgmr.msra.gmra.mrb[0].mxu1 %v381_v25 }
 0x1ae   : > { %v1293_v28 = vpop.f32.mrb[0].mxu1 }
 0x1af   : > { %v477_v29 = vadd.f32 %v1293_v28, %v1173_v27  ;;  %v471_v30 = vpop.f32.mrb[1].mxu1 }
 0x1b0   : > { %v472_v31 = vadd.f32 %v1173_v27, %v471_v30 }
 0x1b2   : > { %v1406_v32 = vpack.c.bf16 %v477_v29, %v472_v31 }
 0x1b4   : > { %1407 = vmatprep.subr.bf16.mxu0 %v1406_v32 }
 0x1b5   : > { %1409 = vmatpush3.bf16.xpose.msra.mxu0 %v1406_v32  ;;  %v682_v32 = vld [vmem:[%s2100_s30] sm:$0xff] }
 0x1bc   : > { %1299 = vmatmul.mubr.f32.vlgmr.msra.gmra.mrb[0].mxu0 %v481_v33  ;;  %v683_v33 = vld [vmem:[%s2100_s30 + $0x8] sm:$0xff] }
 0x1bd   : > { %1301 = vmatprep.mubr.f32.mxu0 %v482_v34  ;;  %v1410_v34 = vpack.c.bf16 %v683_v33, %v682_v32 }
 0x1bf   : > { %1411 = vmatprep.subr.bf16.mxu1 %v1410_v34 }
 0x1c0   : > { %1302 = vmatmul.mubr.f32.gmra.mrb[2].mxu0 %v483_v35  ;;  %1413 = vmatpush3.bf16.msra.mxu1 %v1410_v34  ;;  %v684_v35 = vld [vmem:[%s2100_s30 + $0x10] sm:$0xff] }
 0x1c1   : > { %1304 = vmatprep.mubr.f32.mxu0 %v484_v36  ;;  %v685_v36 = vld [vmem:[%s2100_s30 + $0x18] sm:$0xff] }
 0x1c4   : > { %1305 = vmatmul.mubr.f32.gmra.mrb[4].mxu0 %v485_v37  ;;  %v2161_v37 = vpack.c.bf16 %v685_v36, %v684_v35 }
 0x1c5   : > { %1307 = vmatprep.mubr.f32.mxu0 %v486_v38  ;;  %v880_v38 = vld [vmem:[#allocation9] sm:$0xff] }
 0x1c6   : > { %1415 = vmatprep.subr.bf16.mxu1 %v2161_v37 }
 0x1c8   : > { %1308 = vmatmul.mubr.f32.gmra.mrb[6].mxu0 %v487_v39  ;;  %v881_v39 = vld [vmem:[#allocation9 + $0x8] sm:$0xff] }
 0x28f   : > { %v1300_v40 = vpop.f32.mrb[0].mxu0 }
 0x290   : > { %v554_v41 = vpop.f32.mrb[1].mxu0  ;;  %v597_v45 = vsel %vm593_vm0, %v1300_v40, -inf }
 0x291   : > { %v594_v42 = vsel %vm593_vm0, %v554_v41, -inf }
 0x292   : > { %595 = vmax.xlane.f32.xlu0 %v594_v42  ;;  %v883_v42 = vld [vmem:[#allocation9 + $0x18] sm:$0xff] }
 0x293   : > { %v1303_v43 = vpop.f32.mrb[2].mxu0 }
 0x294   : > { %v564_v44 = vpop.f32.mrb[3].mxu0  ;;  %v603_v49 = vsel %vm593_vm0, %v1303_v43, -inf }
 0x295   : > { %v600_v46 = vsel %vm593_vm0, %v564_v44, -inf }
 0x296   : > { %598 = vmax.xlane.f32.xlu0 %v597_v45  ;;  %601 = vmax.xlane.f32.xlu1 %v600_v46  ;;  %v885_v45 = vld [vmem:[#allocation9 + $0x28] sm:$0xff] }
 0x297   : > { %v1306_v47 = vpop.f32.mrb[4].mxu0 }
 0x298   : > { %v574_v48 = vpop.f32.mrb[5].mxu0  ;;  %v609_v53 = vsel %vm593_vm0, %v1306_v47, -inf }
 0x299   : > { %v606_v50 = vsel %vm593_vm0, %v574_v48, -inf }
 0x29a   : > { %604 = vmax.xlane.f32.xlu1 %v603_v49  ;;  %607 = vmax.xlane.f32.xlu0 %v606_v50  ;;  %v888_v50 = vld [vmem:[#allocation9 + $0x40] sm:$0xff] }
 0x29b   : > { %v1309_v51 = vpop.f32.mrb[6].mxu0 }
 0x29c   : > { %v584_v52 = vpop.f32.mrb[7].mxu0  ;;  %v615_v55 = vsel %vm593_vm0, %v1309_v51, -inf }
 0x29d   : > { %v612_v54 = vsel %vm593_vm0, %v584_v52, -inf }
 0x29e   : > { %610 = vmax.xlane.f32.xlu1 %v609_v53  ;;  %613 = vmax.xlane.f32.xlu0 %v612_v54  ;;  %v890_v53 = vld [vmem:[#allocation9 + $0x50] sm:$0xff]  ;;  %v891_v54 = vld [vmem:[#allocation9 + $0x58] sm:$0xff] }
 0x2a2   : > { %616 = vmax.xlane.f32.xlu1 %v615_v55  ;;  %v1438_v55 = vpack.c.bf16 %v891_v54, %v890_v53 }
 0x31f   : > { %v596_v56 = vpop.xlane.xlu0 %595 }
 0x320   : > { %v618_v57 = vsub.f32 %v554_v41, %v596_v56  ;;  %v1418_v41 = vpack.c.bf16 %v881_v39, %v880_v38  ;;  %v892_v56 = vld [vmem:[#allocation9 + $0x60] sm:$0xff] }
 0x322   : > { %v626_v58 = vmul.f32 1.442695, %v618_v57  ;;  %1419 = vmatprep.subr.bf16.mxu0 %v1418_v41  ;;  %v893_v57 = vld [vmem:[#allocation9 + $0x68] sm:$0xff] }
 0x323   : > { %v599_v59 = vpop.xlane.xlu0 %598  ;;  %v602_v60 = vpop.xlane.xlu1 %601  ;;  %1421 = vmatpush3.bf16.msra.mxu0 %v1418_v41 }
 0x324   : > { %1536 = vpow2.f32 %v626_v58  ;;  %v619_v61 = vsub.f32 %v1300_v40, %v599_v59  ;;  %v620_v62 = vsub.f32 %v564_v44, %v602_v60  ;;  %v882_v40 = vld [vmem:[#allocation9 + $0x10] sm:$0xff]  ;;  %v884_v44 = vld [vmem:[#allocation9 + $0x20] sm:$0xff]  ;;  %v1442_v58 = vpack.c.bf16 %v893_v57, %v892_v56  ;;  %v895_v60 = vld [vmem:[#allocation9 + $0x78] sm:$0xff] }
 0x325   : > { %v1426_v46 = vpack.c.bf16 %v885_v45, %v884_v44  ;;  %v894_v59 = vld [vmem:[#allocation9 + $0x70] sm:$0xff] }
 0x326   : > { %v628_v63 = vmul.f32 1.442695, %v619_v61  ;;  %v630_v0 = vmul.f32 1.442695, %v620_v62  ;;  %v1446_v61 = vpack.c.bf16 %v895_v60, %v894_v59 }
 0x327   : > { %v605_v1 = vpop.xlane.xlu1 %604  ;;  %v608_v2 = vpop.xlane.xlu0 %607 }
 0x328   : > { %1538 = vpow2.f32 %v628_v63  ;;  %v621_v3 = vsub.f32 %v1303_v43, %v605_v1  ;;  %v622_v4 = vsub.f32 %v574_v48, %v608_v2  ;;  %v1422_v43 = vpack.c.bf16 %v883_v42, %v882_v40  ;;  %v887_v48 = vld [vmem:[#allocation9 + $0x38] sm:$0xff] }
 0x329   : > { %1540 = vpow2.f32 %v630_v0 }
 0x32a   : > { %v632_v5 = vmul.f32 1.442695, %v621_v3  ;;  %v634_v6 = vmul.f32 1.442695, %v622_v4  ;;  %1423 = vmatprep.subr.bf16.mxu0 %v1422_v43 }
 0x32b   : > { %v611_v7 = vpop.xlane.xlu1 %610  ;;  %v614_v8 = vpop.xlane.xlu0 %613  ;;  %1425 = vmatpush3.bf16.msra.mxu0 %v1422_v43 }
 0x32c   : > { %1542 = vpow2.f32 %v632_v5  ;;  %v623_v9 = vsub.f32 %v1306_v47, %v611_v7  ;;  %v624_v10 = vsub.f32 %v584_v52, %v614_v8  ;;  %v886_v47 = vld [vmem:[#allocation9 + $0x30] sm:$0xff]  ;;  %1427 = vmatprep.subr.bf16.mxu0 %v1426_v46 }
 0x32d   : > { %1544 = vpow2.f32 %v634_v6  ;;  %v1430_v49 = vpack.c.bf16 %v887_v48, %v886_v47 }
 0x32e   : > { %v2125_v11 = vpop.eup %1536  ;;  %v636_v12 = vmul.f32 1.442695, %v623_v9  ;;  %v638_v13 = vmul.f32 1.442695, %v624_v10 }
 0x32f   : > { %v617_v14 = vpop.xlane.xlu1 %616  ;;  %v642_v15 = vsel %vm593_vm0, %v2125_v11, 0.0  ;;  %1429 = vmatpush3.bf16.msra.mxu0 %v1426_v46 }
 0x330   : > { %1546 = vpow2.f32 %v636_v12  ;;  %v625_v16 = vsub.f32 %v1309_v51, %v617_v14  ;;  %643 = vadd.xlane.f32.xlu0 %v642_v15  ;;  %v889_v51 = vld [vmem:[#allocation9 + $0x48] sm:$0xff]  ;;  %1431 = vmatprep.subr.bf16.mxu0 %v1430_v49 }
 0x331   : > { %1548 = vpow2.f32 %v638_v13  ;;  %v1434_v52 = vpack.c.bf16 %v889_v51, %v888_v50 }
 0x332   : > { %v2129_v17 = vpop.eup %1538  ;;  %v640_v18 = vmul.f32 1.442695, %v625_v16 }
 0x333   : > { %v2131_v19 = vpop.eup %1540  ;;  %v645_v20 = vsel %vm593_vm0, %v2129_v17, 0.0  ;;  %1433 = vmatpush3.bf16.msra.mxu0 %v1430_v49 }
 0x334   : > { %1550 = vpow2.f32 %v640_v18  ;;  %646 = vadd.xlane.f32.xlu1 %v645_v20  ;;  %v648_v21 = vsel %vm593_vm0, %v2131_v19, 0.0  ;;  %1435 = vmatprep.subr.bf16.mxu0 %v1434_v52 }
 0x335   : > { %649 = vadd.xlane.f32.xlu0 %v648_v21 }
 0x336   : > { %v2137_v22 = vpop.eup %1542 }
 0x337   : > { %v2139_v23 = vpop.eup %1544  ;;  %v651_v24 = vsel %vm593_vm0, %v2137_v22, 0.0  ;;  %1437 = vmatpush3.bf16.msra.mxu0 %v1434_v52 }
 0x338   : > { %652 = vadd.xlane.f32.xlu1 %v651_v24  ;;  %v654_v25 = vsel %vm593_vm0, %v2139_v23, 0.0  ;;  %1439 = vmatprep.subr.bf16.mxu0 %v1438_v55 }
 0x339   : > { %655 = vadd.xlane.f32.xlu0 %v654_v25 }
 0x33a   : > { %v2145_v26 = vpop.eup %1546 }
 0x33b   : > { %v2147_v27 = vpop.eup %1548  ;;  %v657_v28 = vsel %vm593_vm0, %v2145_v26, 0.0  ;;  %1441 = vmatpush3.bf16.msra.mxu0 %v1438_v55 }
 0x33c   : > { %658 = vadd.xlane.f32.xlu1 %v657_v28  ;;  %v660_v29 = vsel %vm593_vm0, %v2147_v27, 0.0  ;;  %1443 = vmatprep.subr.bf16.mxu0 %v1442_v58 }
 0x33d   : > { %661 = vadd.xlane.f32.xlu0 %v660_v29 }
 0x33e   : > { %v2153_v30 = vpop.eup %1550 }
 0x33f   : > { %v663_v31 = vsel %vm593_vm0, %v2153_v30, 0.0  ;;  %1445 = vmatpush3.bf16.msra.mxu0 %v1442_v58 }
 0x340   : > { %664 = vadd.xlane.f32.xlu1 %v663_v31  ;;  %1447 = vmatprep.subr.bf16.mxu0 %v1446_v61 }
 0x343   : > { %1449 = vmatpush3.bf16.msra.mxu0 %v1446_v61 }
 0x3bd   : > { %v644_v62 = vpop.xlane.xlu0 %643 }
 0x3be   : > { %1552 = vrcp.f32 %v644_v62 }
 0x3c1   : > { %v647_v63 = vpop.xlane.xlu1 %646 }
 0x3c2   : > { %1554 = vrcp.f32 %v647_v63  ;;  %v650_v0 = vpop.xlane.xlu0 %649 }
 0x3c3   : > { %1556 = vrcp.f32 %v650_v0 }
 0x3c5   : > { %v653_v1 = vpop.xlane.xlu1 %652 }
 0x3c6   : > { %1558 = vrcp.f32 %v653_v1  ;;  %v656_v2 = vpop.xlane.xlu0 %655 }
 0x3c7   : > { %1560 = vrcp.f32 %v656_v2 }
 0x3c8   : > { %v1553_v3 = vpop.eup %1552 }
 0x3c9   : > { %v659_v4 = vpop.xlane.xlu1 %658  ;;  %v674_v5 = vmul.f32 %v1553_v3, %v2125_v11 }
 0x3ca   : > { %1562 = vrcp.f32 %v659_v4  ;;  %v662_v6 = vpop.xlane.xlu0 %661 }
 0x3cb   : > { %1564 = vrcp.f32 %v662_v6  ;;  %1314 = vmatprep.mubr.msk.f32.mxu1 %vm593_vm0, %v674_v5 }
 0x3cc   : > { %v1555_v7 = vpop.eup %1554 }
 0x3cd   : > { %v1557_v8 = vpop.eup %1556  ;;  %v675_v9 = vmul.f32 %v1555_v7, %v2129_v17  ;;  %v665_v10 = vpop.xlane.xlu1 %664 }
 0x3ce   : > { %1566 = vrcp.f32 %v665_v10  ;;  %v676_v12 = vmul.f32 %v1557_v8, %v2131_v19 }
 0x3cf   : > { %1315 = vmatmul.mubr.msk.f32.vlgmr.msra.gmra.mrb[2].mxu1 %vm593_vm0, %v675_v9 }
 0x3d0   : > { %v1559_v13 = vpop.eup %1558  ;;  %1417 = vmatpush3.bf16.msra.mxu1 %v2161_v37  ;;  %1317 = vmatprep.mubr.msk.f32.mxu1 %vm593_vm0, %v676_v12 }
 0x3d1   : > { %v1561_v11 = vpop.eup %1560  ;;  %v677_v14 = vmul.f32 %v1559_v13, %v2137_v22 }
 0x3d2   : > { %v678_v15 = vmul.f32 %v1561_v11, %v2139_v23 }
 0x3d3   : > { %1318 = vmatmul.mubr.msk.f32.gmra.mrb[4].mxu1 %vm593_vm0, %v677_v14 }
 0x3d4   : > { %v1563_v16 = vpop.eup %1562  ;;  %1324 = vmatprep.mubr.msk.f32.mxu1 %vm593_vm0, %v678_v15 }
 0x3d5   : > { %v1565_v17 = vpop.eup %1564  ;;  %v679_v18 = vmul.f32 %v1563_v16, %v2145_v26 }
 0x3d6   : > { %v680_v19 = vmul.f32 %v1565_v17, %v2147_v27 }
 0x3d7   : > { %1325 = vmatmul.mubr.msk.f32.vlgmr.msra.gmra.mrb[6].mxu1 %vm593_vm0, %v679_v18 }
 0x3d8   : > { %v1567_v20 = vpop.eup %1566  ;;  %1327 = vmatprep.mubr.msk.f32.mxu1 %vm593_vm0, %v680_v19 }
 0x3d9   : > { %v681_v21 = vmul.f32 %v1567_v20, %v2153_v30  ;;  %v1182_v30 = vld [vmem:[%s2242_s6] ss:$0 sm:$0xff] }
 0x3db   : > { %1328 = vmatmul.mubr.msk.f32.gmra.mrb[8].mxu1 %vm593_vm0, %v681_v21 }
 0x4a2   : > { %v1316_v22 = vpop.f32.mrb[2].mxu1 }
 0x4a3   : > { %v764_v23 = vpop.f32.mrb[3].mxu1 }
 0x4a4   : > { %1362 = vmatprep.mubr.f32.mxu0 %v764_v23 }
 0x4a5   : > { %1363 = vmatmul.mubr.f32.vlgmr.msra.gmra.mrb[8].mxu0 %v1316_v22 }
 0x4a6   : > { %v1319_v24 = vpop.f32.mrb[4].mxu1 }
 0x4a7   : > { %v774_v25 = vpop.f32.mrb[5].mxu1 }
 0x4a8   : > { %1365 = vmatprep.mubr.f32.mxu0 %v774_v25 }
 0x4a9   : > { %1366 = vmatmul.mubr.f32.gmra.mrb[10].mxu0 %v1319_v24 }
 0x4aa   : > { %v1326_v26 = vpop.f32.mrb[6].mxu1 }
 0x4ab   : > { %v861_v27 = vpop.f32.mrb[7].mxu1 }
 0x4ac   : > { %1368 = vmatprep.mubr.f32.mxu0 %v861_v27 }
 0x4ad   : > { %1369 = vmatmul.mubr.f32.gmra.mrb[12].mxu0 %v1326_v26 }
 0x4ae   : > { %v1329_v28 = vpop.f32.mrb[8].mxu1 }
 0x4af   : > { %v871_v29 = vpop.f32.mrb[9].mxu1 }
 0x4b0   : > { %1371 = vmatprep.mubr.f32.mxu0 %v871_v29 }
 0x4b1   : > { %1372 = vmatmul.mubr.f32.gmra.mrb[14].mxu0 %v1329_v28 }
 0x578   : > { %v1364_v31 = vpop.f32.mrb[8].mxu0 }
 0x579   : > { %v975_v32 = vadd.f32 %v1364_v31, %v1182_v30  ;;  %v969_v33 = vpop.f32.mrb[9].mxu0 }
 0x57a   : > { %v970_v34 = vadd.f32 %v1182_v30, %v969_v33 }
 0x57b   : > { %1009 = vst [vmem:[%s376_s20 + $0x8] sm:$0xff] %v975_v32 }
 0x57c   : > { %1008 = vst [vmem:[%s376_s20] sm:$0xff] %v970_v34  ;;  %v1367_v35 = vpop.f32.mrb[10].mxu0 }
 0x57d   : > { %v985_v36 = vadd.f32 %v1367_v35, %v1182_v30  ;;  %v979_v37 = vpop.f32.mrb[11].mxu0 }
 0x57e   : > { %v980_v38 = vadd.f32 %v1182_v30, %v979_v37 }
 0x57f   : > { %1011 = vst [vmem:[%s376_s20 + $0x18] sm:$0xff] %v985_v36 }
 0x580   : > { %1010 = vst [vmem:[%s376_s20 + $0x10] sm:$0xff] %v980_v38  ;;  %v1370_v39 = vpop.f32.mrb[12].mxu0 }
 0x581   : > { %v995_v40 = vadd.f32 %v1370_v39, %v1182_v30  ;;  %v989_v41 = vpop.f32.mrb[13].mxu0 }
 0x582   : > { %v990_v42 = vadd.f32 %v1182_v30, %v989_v41 }
 0x583   : > { %1013 = vst [vmem:[%s376_s20 + $0x28] sm:$0xff] %v995_v40 }
 0x584   : > { %1012 = vst [vmem:[%s376_s20 + $0x20] sm:$0xff] %v990_v42  ;;  %v1373_v43 = vpop.f32.mrb[14].mxu0 }
 0x585   : > { %v1005_v44 = vadd.f32 %v1373_v43, %v1182_v30  ;;  %v999_v45 = vpop.f32.mrb[15].mxu0 }
 0x586   : > { %v1000_v46 = vadd.f32 %v1182_v30, %v999_v45 }
 0x587   : > { %1015 = vst [vmem:[%s376_s20 + $0x38] sm:$0xff] %v1005_v44 }
 0x588   : > { %1014 = vst [vmem:[%s376_s20 + $0x30] sm:$0xff] %v1000_v46 }
 0x589   : > { %1725 = shalt.err (!%p1722_p0)
}
 0x58a   : > { %s1726_s15 = scalar_lea.hbm %s2192_s17, 1024  ;;  %s1730_s16 = scalar_lea.hbm %s2243_s7, 2048 }
 0x58b   : > { %p1727_p3 = scmp.ne.s32.totalorder %s2192_s17, %s1726_s15  ;;  %p1731_p5 = scmp.lt.u32.totalorder %s2192_s17, %s2243_s7 }
 0x58c   : > { %p1732_p7 = scmp.lt.u32.totalorder %s1730_s16, %s1726_s15  ;;  %p1734_p2 = scmp.lt.u32.totalorder %s1726_s15, %s2192_s17 }
 0x58d   : > { %p1728_p11 = pnand %p1727_p3, %p2290_p8 }
 0x58e   : > { %p1733_p9 = por %p1732_p7, %p1731_p5 }
 0x58f   : > { %p1729_p13 = pneg %p1728_p11 }
 0x590   : > { %p1735_p6 = por %p1734_p2, %p1733_p9 }
 0x592   : > { %p1736_p12 = pnand %p1735_p6, %p1729_p13 }
 0x594   : > { %1739 = shalt.err (!%p1736_p12)
}
 0x595   : > { %s1800_s18 = smov 128   ;;  %s1801_s0 = smov 8  }
 0x596   : > { %1466 = dma.vmem_to_hbm [thread:$0]  (%p2290_p8), %s2187_s19, 1024, %s2192_s17, %s1017_s3, %s1800_s18, %s1800_s18, %s1801_s0  }
 0x597 PF: > { %s2291_s23 = sld [smem:[#allocation18_spill]]  ;;  %s1046_s20 = sand.u32 1, %s1778_s24  }
 0x598   : > { %p2293_p4 = scmp.ge.s32.totalorder %s1790_s27, 2  ;;  %s1047_s22 = scalar_lea.sflag [#allocation4], %s1046_s20 }
 0x59d   : > { %p2292_p1 = scmp.ne.s32.totalorder %s2291_s23, 0 }
 0x59f   : > { %p1486_p10 = pnand %p2293_p4, %p2292_p1 }
 0x5a1   : > { %1773 = dma.done.wait (!%p1486_p10), %s1047_s22, 1024  }
 0x5a2   : > { %1775 = vsyncadd (!%p1486_p10), %s1047_s22, 4294966272  ;;  %s2294_s27 = sld [smem:[#allocation16_spill]]  ;;  %s2295_s11 = sld [smem:[#allocation17_spill]] }
 0x5a3   : > { %s2296_s24 = smov %s1782_s25  ;;  %s2297_s25 = smov %s1786_s26 }
 0x5a8   : > { %p19_p0 = scmp.ge.s32.totalorder %s2294_s27, 4   ;;  %s2298_s26 = smov %s2295_s11 }
 0x5aa   :  { %21 = sbr.rel (!%p19_p0) target bundleno = 9 (0x9), region = 115 }
 0x5b1   :  { %1052 = vsyncpa [#allocation3], 1 }
 0x5b2   :  { %1054 = vsyncpa [#allocation3 + $0x1], 1 }
 0x5b3   :  { %1055 = vsyncpa [#allocation6], 1 }
 0x5b4   :  { %1056 = vsyncpa [#allocation4], 1 }
 0x5b5   :  { %1058 = vsyncpa [#allocation4 + $0x1], 1 }

</bundles_post_ra>
